<compile_context>
chip_gen: v7x
topology: tpu7x:2x2x1
jax: 0.10.0
libtpu: 0.0.40
codegen_flags: <defaults>
</compile_context>

<pallas_src>
import jax
import jax.numpy as jnp
from jax.experimental import pallas as pl
from jax.experimental.pallas import tpu as pltpu


def _round_up(x, m):
    return (x + m - 1) // m * m


def _make_kernel(compute_dtype):
    def kernel(xt_ref, w1_ref, b1_ref, w2_ref, b2_ref, wh_ref, bh_ref, out_ref):
        # Transposed orientation: features on sublanes, batch on lanes.
        xt = xt_ref[...]                                                        # (S, bt)
        h = jnp.dot(w1_ref[...], xt, preferred_element_type=jnp.float32) + b1_ref[...]
        h = jnp.maximum(h, 0.0).astype(compute_dtype)                           # (H, bt)
        h = jnp.dot(w2_ref[...], h, preferred_element_type=jnp.float32) + b2_ref[...]
        h = jnp.maximum(h, 0.0).astype(compute_dtype)                           # (H, bt)
        # Fused heads: sublane 0 = value, sublanes 1..A = advantage, remaining sublanes exact zeros.
        out_ref[...] = (jnp.dot(wh_ref[...], h, preferred_element_type=jnp.float32)
                        + bh_ref[...])                                          # (HP, bt), f32
    return kernel


def dueling_q_forward(x, params, *, block_batch=2048, compute_dtype=jnp.bfloat16):
    """params = (w1, b1, w2, b2, wv, bv, wa, ba); weights are (in, out), biases (1, out)."""
    w1, b1, w2, b2, wv, bv, wa, ba = params
    B, S = x.shape
    H = w1.shape[1]
    A = wa.shape[1]
    HP = _round_up(1 + A, 8)                     # fused-head rows, 8-sublane aligned

    # Host-side prep (constant-folded under jit): transpose weights, fuse + zero-pad the two heads.
    w1t = w1.T.astype(compute_dtype)             # (H, S)
    b1t = b1.T                                   # (H, 1), f32
    w2t = w2.T.astype(compute_dtype)             # (H, H)
    b2t = b2.T                                   # (H, 1), f32
    wht = (jnp.zeros((HP, H), jnp.float32)
           .at[0:1].set(wv.T).at[1:1 + A].set(wa.T)).astype(compute_dtype)
    bht = jnp.zeros((HP, 1), jnp.float32).at[0:1].set(bv.T).at[1:1 + A].set(ba.T)

    # Batch lives on the 128-lane axis, tiled; only pad/cast when strictly needed.
    bt = min(_round_up(block_batch, 128), _round_up(B, 128))
    B_pad = _round_up(B, bt)
    nb = B_pad // bt

    xt = x.T.astype(compute_dtype)               # (S, B) — tiny transpose, per review
    if B_pad != B:
        xt = jnp.pad(xt, ((0, 0), (0, B_pad - B)))

    const = lambda shape: pl.BlockSpec(shape, lambda j: (0, 0))

    y_t = pl.pallas_call(
        _make_kernel(compute_dtype),
        out_shape=jax.ShapeDtypeStruct((HP, B_pad), jnp.float32),
        grid_spec=pltpu.PrefetchScalarGridSpec(
            num_scalar_prefetch=0,
            grid=(nb,),                                         # one axis: batch column tiles
            in_specs=[
                pl.BlockSpec((S, bt), lambda j: (0, j)),        # x^T: one batch tile per step
                const((H, S)), const((H, 1)),                   # L1 weight/bias (VMEM resident)
                const((H, H)), const((H, 1)),                   # L2 weight/bias
                const((HP, H)), const((HP, 1)),                 # fused value+advantage head
            ],
            out_specs=pl.BlockSpec((HP, bt), lambda j: (0, j)),
        ),
        compiler_params=pltpu.CompilerParams(
            dimension_semantics=("parallel",),                  # batch tiles independent -> v7x megacore
        ),
    )(xt, w1t, b1t, w2t, b2t, wht, bht)

    # Tiny wrapper epilogue over (1+A, B): global adv.mean() and combine, exactly as in torch.
    y = y_t[:1 + A, :B]                           # padded batch columns never consumed
    val = y[0:1, :]                               # (1, B)
    adv = y[1:1 + A, :]                           # (A, B)
    return (val + adv - jnp.mean(adv)).T          # (B, A)


def init_params(key, state_size, hidden_size, action_size):
    """Deterministic init mimicking nn.Linear default (uniform +/- 1/sqrt(fan_in))."""
    def linear(k, fan_in, fan_out):
        kw, kb = jax.random.split(k)
        bound = 1.0 / jnp.sqrt(jnp.float32(fan_in))
        w = jax.random.uniform(kw, (fan_in, fan_out), jnp.float32, -bound, bound)
        b = jax.random.uniform(kb, (1, fan_out), jnp.float32, -bound, bound)
        return w, b

    k1, k2, k3, k4 = jax.random.split(key, 4)
    w1, b1 = linear(k1, state_size, hidden_size)   # base_modules[0]
    w2, b2 = linear(k2, hidden_size, hidden_size)  # base_modules[1] (hidden_layers=1)
    wv, bv = linear(k3, hidden_size, 1)            # value head
    wa, ba = linear(k4, hidden_size, action_size)  # advantage head
    return (w1, b1, w2, b2, wv, bv, wa, ba)


def reference_forward(x, params, compute_dtype=jnp.float32):
    w1, b1, w2, b2, wv, bv, wa, ba = params
    c = lambda a: a.astype(compute_dtype)
    h = jnp.maximum(jnp.dot(c(x), c(w1), preferred_element_type=jnp.float32) + b1, 0.0)
    h = jnp.maximum(jnp.dot(c(h), c(w2), preferred_element_type=jnp.float32) + b2, 0.0)
    val = jnp.dot(c(h), c(wv), preferred_element_type=jnp.float32) + bv
    adv = jnp.dot(c(h), c(wa), preferred_element_type=jnp.float32) + ba
    return val + adv - adv.mean()


if __name__ == "__main__":
    B, STATE, HIDDEN, ACTIONS = 2, 8, 32, 4

    key = jax.random.PRNGKey(0)
    kx, kp = jax.random.split(key)
    x = jax.random.normal(kx, (B, STATE), jnp.float32)
    params = init_params(kp, STATE, HIDDEN, ACTIONS)

    # f32 path: exact PyTorch semantics.
    out = jax.block_until_ready(dueling_q_forward(x, params, compute_dtype=jnp.float32))
    ref = reference_forward(x, params)
    assert out.shape == (B, ACTIONS)
    assert jnp.allclose(out, ref, atol=1e-5, rtol=1e-5), (out, ref)

    # bf16-operand default path (feeds the v6e/v7x MXU natively; f32 accumulation, f32 bias/ReLU).
    out_bf16 = jax.block_until_ready(dueling_q_forward(x, params))
    ref_bf16 = reference_forward(x, params, compute_dtype=jnp.bfloat16)
    assert out_bf16.shape == (B, ACTIONS)
    assert jnp.allclose(out_bf16, ref_bf16, atol=5e-2, rtol=5e-2), (out_bf16, ref_bf16)

    print("KERNEL_OK")
</pallas_src>

<mosaic_0001>
module attributes {stable_mosaic.version = 11 : i64} {
  func.func @kernel(%arg0: i32, %arg1: memref<8x128xf32, #tpu.memory_space<vmem>>, %arg2: memref<32x8xf32, #tpu.memory_space<vmem>>, %arg3: memref<32x1xf32, #tpu.memory_space<vmem>>, %arg4: memref<32x32xf32, #tpu.memory_space<vmem>>, %arg5: memref<32x1xf32, #tpu.memory_space<vmem>>, %arg6: memref<8x32xf32, #tpu.memory_space<vmem>>, %arg7: memref<8x1xf32, #tpu.memory_space<vmem>>, %arg8: memref<8x128xf32, #tpu.memory_space<vmem>>) attributes {dimension_semantics = [#tpu.dimension_semantics<parallel>], iteration_bounds = array<i64: 1>, scalar_prefetch = 0 : i64, scratch_operands = 0 : i64, tpu.core_type = #tpu.core_type<tc>, window_params = [{transform_indices = @transform_0, window_bounds = array<i64: 8, 128>}, {pipeline_mode = #tpu.pipeline_mode<synchronous>, transform_indices = @transform_1, window_bounds = array<i64: 32, 8>}, {pipeline_mode = #tpu.pipeline_mode<synchronous>, transform_indices = @transform_2, window_bounds = array<i64: 32, 1>}, {pipeline_mode = #tpu.pipeline_mode<synchronous>, transform_indices = @transform_3, window_bounds = array<i64: 32, 32>}, {pipeline_mode = #tpu.pipeline_mode<synchronous>, transform_indices = @transform_4, window_bounds = array<i64: 32, 1>}, {pipeline_mode = #tpu.pipeline_mode<synchronous>, transform_indices = @transform_5, window_bounds = array<i64: 8, 32>}, {pipeline_mode = #tpu.pipeline_mode<synchronous>, transform_indices = @transform_6, window_bounds = array<i64: 8, 1>}, {transform_indices = @transform_7, window_bounds = array<i64: 8, 128>}]} {
    %c0 = arith.constant 0 : index
    %c0_0 = arith.constant 0 : index
    %0 = vector.load %arg1[%c0, %c0_0] : memref<8x128xf32, #tpu.memory_space<vmem>>, vector<8x128xf32>
    %c0_1 = arith.constant 0 : index
    %c0_2 = arith.constant 0 : index
    %1 = vector.load %arg2[%c0_1, %c0_2] : memref<32x8xf32, #tpu.memory_space<vmem>>, vector<32x8xf32>
    %cst = arith.constant dense<0.000000e+00> : vector<32x128xf32>
    %2 = tpu.matmul %1, %0, %cst {dimension_numbers = #tpu.dot_dimension_numbers<[1], [0], [0], [1], [0, 0, 1, 1], [], []>} : vector<32x8xf32>, vector<8x128xf32>, vector<32x128xf32> -> vector<32x128xf32>
    %c0_3 = arith.constant 0 : index
    %c0_4 = arith.constant 0 : index
    %3 = vector.load %arg3[%c0_3, %c0_4] : memref<32x1xf32, #tpu.memory_space<vmem>>, vector<32x1xf32>
    %4 = vector.broadcast %3 : vector<32x1xf32> to vector<32x128xf32>
    %5 = arith.addf %2, %4 : vector<32x128xf32>
    %cst_5 = arith.constant 0.000000e+00 : f32
    %6 = vector.broadcast %cst_5 : f32 to vector<32x128xf32>
    %7 = arith.maximumf %5, %6 : vector<32x128xf32>
    %c0_6 = arith.constant 0 : index
    %c0_7 = arith.constant 0 : index
    %8 = vector.load %arg4[%c0_6, %c0_7] : memref<32x32xf32, #tpu.memory_space<vmem>>, vector<32x32xf32>
    %cst_8 = arith.constant dense<0.000000e+00> : vector<32x128xf32>
    %9 = tpu.matmul %8, %7, %cst_8 {dimension_numbers = #tpu.dot_dimension_numbers<[1], [0], [0], [1], [0, 0, 1, 1], [], []>} : vector<32x32xf32>, vector<32x128xf32>, vector<32x128xf32> -> vector<32x128xf32>
    %c0_9 = arith.constant 0 : index
    %c0_10 = arith.constant 0 : index
    %10 = vector.load %arg5[%c0_9, %c0_10] : memref<32x1xf32, #tpu.memory_space<vmem>>, vector<32x1xf32>
    %11 = vector.broadcast %10 : vector<32x1xf32> to vector<32x128xf32>
    %12 = arith.addf %9, %11 : vector<32x128xf32>
    %cst_11 = arith.constant 0.000000e+00 : f32
    %13 = vector.broadcast %cst_11 : f32 to vector<32x128xf32>
    %14 = arith.maximumf %12, %13 : vector<32x128xf32>
    %c0_12 = arith.constant 0 : index
    %c0_13 = arith.constant 0 : index
    %15 = vector.load %arg6[%c0_12, %c0_13] : memref<8x32xf32, #tpu.memory_space<vmem>>, vector<8x32xf32>
    %cst_14 = arith.constant dense<0.000000e+00> : vector<8x128xf32>
    %16 = tpu.matmul %15, %14, %cst_14 {dimension_numbers = #tpu.dot_dimension_numbers<[1], [0], [0], [1], [0, 0, 1, 1], [], []>} : vector<8x32xf32>, vector<32x128xf32>, vector<8x128xf32> -> vector<8x128xf32>
    %c0_15 = arith.constant 0 : index
    %c0_16 = arith.constant 0 : index
    %17 = vector.load %arg7[%c0_15, %c0_16] : memref<8x1xf32, #tpu.memory_space<vmem>>, vector<8x1xf32>
    %18 = vector.broadcast %17 : vector<8x1xf32> to vector<8x128xf32>
    %19 = arith.addf %16, %18 : vector<8x128xf32>
    %c0_17 = arith.constant 0 : index
    %c0_18 = arith.constant 0 : index
    %20 = vector.load %arg8[%c0_17, %c0_18] : memref<8x128xf32, #tpu.memory_space<vmem>>, vector<8x128xf32>
    tpu.vector_store %arg8[%c0_17, %c0_18], %19 {strides = array<i32>} : memref<8x128xf32, #tpu.memory_space<vmem>>, vector<8x128xf32>,
    return
  }
  func.func @transform_0(%arg0: i32) -> (i32, i32) {
    %c0_i32 = arith.constant 0 : i32
    %c0_i32_0 = arith.constant 0 : i32
    return %c0_i32, %arg0 : i32, i32
  }
  func.func @transform_1(%arg0: i32) -> (i32, i32) {
    %c0_i32 = arith.constant 0 : i32
    %c0_i32_0 = arith.constant 0 : i32
    %c0_i32_1 = arith.constant 0 : i32
    return %c0_i32, %c0_i32_0 : i32, i32
  }
  func.func @transform_2(%arg0: i32) -> (i32, i32) {
    %c0_i32 = arith.constant 0 : i32
    %c0_i32_0 = arith.constant 0 : i32
    %c0_i32_1 = arith.constant 0 : i32
    return %c0_i32, %c0_i32_0 : i32, i32
  }
  func.func @transform_3(%arg0: i32) -> (i32, i32) {
    %c0_i32 = arith.constant 0 : i32
    %c0_i32_0 = arith.constant 0 : i32
    %c0_i32_1 = arith.constant 0 : i32
    return %c0_i32, %c0_i32_0 : i32, i32
  }
  func.func @transform_4(%arg0: i32) -> (i32, i32) {
    %c0_i32 = arith.constant 0 : i32
    %c0_i32_0 = arith.constant 0 : i32
    %c0_i32_1 = arith.constant 0 : i32
    return %c0_i32, %c0_i32_0 : i32, i32
  }
  func.func @transform_5(%arg0: i32) -> (i32, i32) {
    %c0_i32 = arith.constant 0 : i32
    %c0_i32_0 = arith.constant 0 : i32
    %c0_i32_1 = arith.constant 0 : i32
    return %c0_i32, %c0_i32_0 : i32, i32
  }
  func.func @transform_6(%arg0: i32) -> (i32, i32) {
    %c0_i32 = arith.constant 0 : i32
    %c0_i32_0 = arith.constant 0 : i32
    %c0_i32_1 = arith.constant 0 : i32
    return %c0_i32, %c0_i32_0 : i32, i32
  }
  func.func @transform_7(%arg0: i32) -> (i32, i32) {
    %c0_i32 = arith.constant 0 : i32
    %c0_i32_0 = arith.constant 0 : i32
    return %c0_i32, %arg0 : i32, i32
  }
}

</mosaic_0001>

<bundles_post_ra>
// kernel: tpu_custom_call.1
= control target key start
LH: loop header
LB: loop body
LE: loop exit
PB: predicated region body
PF: predicated region fallthrough
CT: control target
= control target key end

     0   :  { %vm56_vm0 = vcmask 64512   ;;  %v488_v5 = vmov 0   ;;  %s611_s0 = inlined_call_operand.vmem [shape: f32[8,128], index: 0, kind: input, shape index: {}]   ;;  %s612_s1 = inlined_call_operand.vmem [shape: f32[32,8], index: 1, kind: input, shape index: {}]   ;;  %s613_s2 = inlined_call_operand.vmem [shape: f32[32,1], index: 2, kind: input, shape index: {}]   ;;  %s614_s3 = inlined_call_operand.vmem [shape: f32[32,32], index: 3, kind: input, shape index: {}]   ;;  %s615_s4 = inlined_call_operand.vmem [shape: f32[32,1], index: 4, kind: input, shape index: {}]   ;;  %s616_s5 = inlined_call_operand.vmem [shape: f32[8,32], index: 5, kind: input, shape index: {}]   ;;  %s617_s6 = inlined_call_operand.vmem [shape: f32[8,1], index: 6, kind: input, shape index: {}]   ;;  %s618_s7 = inlined_call_operand.hbm [shape: f32[8,128], index: 7, kind: output, shape index: {}]  }
   0x1   :  { %v27_v0 = vld [vmem:[%s611_s0] sm:$0xff]  ;;  %v29_v2 = vld [vmem:[%s612_s1 + $0x8] sm:$0xff]  ;;  %v30_v3 = vld [vmem:[%s612_s1 + $0x10] sm:$0xff]  ;;  %462 = vset.pattern.permute.xlu0 %v488_v5  ;;  %463 = vset.pattern.permute.xlu1 %v488_v5 }
   0x2   :  { %v28_v1 = vld [vmem:[%s612_s1] sm:$0xff]  ;;  %410 = vmatprep.subr.mxu0 %v27_v0  ;;  %v34_v6 = vld [vmem:[%s613_s2 + $0x10] sm:$0xff]  ;;  %v31_v7 = vld [vmem:[%s612_s1 + $0x18] sm:$0xff] }
   0x3   :  { %412 = vmatprep.mubr.msk.f32.mxu0 %vm56_vm0, %v28_v1  ;;  %v32_v4 = vld [vmem:[%s613_s2] sm:$0xff]  ;;  %411 = vmatpush3.msra.mxu0 %v27_v0  ;;  %v33_v8 = vld [vmem:[%s613_s2 + $0x8] sm:$0xff] }
   0x4   :  { %413 = vmatmul.mubr.msk.f32.vlgmr.msra.gmra.mrb[0].mxu0 %vm56_vm0, %v29_v2  ;;  %38 = vperm.xlu0 %462, %v32_v4  }
   0x5   :  { %415 = vmatprep.mubr.msk.f32.mxu0 %vm56_vm0, %v30_v3 }
   0x6   :  { %12 = vsyncpa [#allocation3], 0  ;;  %48 = vperm.xlu1 %463, %v34_v6   ;;  %v35_v9 = vld [vmem:[%s613_s2 + $0x18] sm:$0xff]  ;;  %v162_v10 = vld [vmem:[%s615_s4] sm:$0xff]  ;;  %vm186_vm1 = vcmask 261120   ;;  %v489_v37 = vmov 0.0|0.0  }
   0x7   :  { %v163_v11 = vld [vmem:[%s615_s4 + $0x8] sm:$0xff]  ;;  %v164_v12 = vld [vmem:[%s615_s4 + $0x10] sm:$0xff]  ;;  %v165_v13 = vld [vmem:[%s615_s4 + $0x18] sm:$0xff]  ;;  %451 = vmatprep.subr.bf16.mxu0 %v489_v37  ;;  %vm490_vm2 = vmmov 0   ;;  %v491_v38 = vmov 0.0   ;;  %s492_s10 = smov [#allocation2]  }
   0x8   :  { %416 = vmatmul.mubr.msk.f32.gmra.mrb[2].mxu0 %vm56_vm0, %v31_v7  ;;  %43 = vperm.xlu0 %462, %v33_v8   ;;  %v289_v14 = vld [vmem:[%s617_s6] sm:$0xff]  ;;  %v159_v34 = vld [vmem:[%s614_s3 + $0x8] sm:$0xff]  ;;  %v160_v35 = vld [vmem:[%s614_s3 + $0x10] sm:$0xff]  ;;  %s375_s0 = sshll.u32 %s492_s10, 4  ;;  %s376_s0 = int_to_ptr.vmem [resolvable:$true] %s375_s0 }
   0x9   :  { %v158_v15 = vld [vmem:[%s614_s3] sm:$0xff]  ;;  %v161_v36 = vld [vmem:[%s614_s3 + $0x18] sm:$0xff]  ;;  %440 = vmatprep.mubr.msk.f32.mxu0 %vm490_vm2, %v491_v38  ;;  %s464_s11 = scalar_lea.vmem %s376_s0, 128  ;;  %p469_p1 = scmp.lt.s32.totalorder %s376_s0, %s376_s0 }
   0xa   :  { %53 = vperm.xlu1 %463, %v35_v9   ;;  %426 = vmatprep.mubr.msk.f32.mxu1 %vm186_vm1, %v158_v15  ;;  %v288_v57 = vld [vmem:[%s616_s5] sm:$0xff]  ;;  %p465_p0 = scmp.ne.s32.totalorder %s376_s0, %s464_s11  ;;  %p470_p2 = scmp.lt.s32.totalorder %s464_s11, %s464_s11 }
   0xc   :  { %168 = vperm.xlu0 %462, %v162_v10   ;;  %p471_p3 = por %p470_p2, %p469_p1 }
   0xe   :  { %173 = vperm.xlu1 %463, %v163_v11   ;;  %p472_p4 = pnand %p471_p3, %p465_p0 }
  0x10   :  { %178 = vperm.xlu0 %462, %v164_v12  }
  0x12   :  { %183 = vperm.xlu1 %463, %v165_v13  }
  0x14   :  { %292 = vperm.xlu0 %462, %v289_v14  }
  0x83   :  { %v39_v16 = vpop.permute.xlu0 %38 }
  0x85   :  { %v49_v17 = vpop.permute.xlu1 %48 }
  0x87   :  { %v44_v18 = vpop.permute.xlu0 %43 }
  0x89   :  { %v54_v24 = vpop.permute.xlu1 %53 }
  0x8b   :  { %v169_v40 = vpop.permute.xlu0 %168 }
  0x8d   :  { %v174_v39 = vpop.permute.xlu1 %173 }
  0x8f   :  { %v179_v49 = vpop.permute.xlu0 %178 }
  0x91   :  { %v184_v46 = vpop.permute.xlu1 %183 }
  0x93   :  { %v293_v58 = vpop.permute.xlu0 %292 }
  0xd7   :  { %v414_v19 = vpop.f32.mrb[0].mxu0 }
  0xd8   :  { %v141_v20 = vadd.f32 %v414_v19, %v44_v18  ;;  %v135_v21 = vpop.f32.mrb[1].mxu0 }
  0xd9   :  { %v136_v22 = vadd.f32 %v135_v21, %v39_v16 }
  0xda   :  { %v155_v23 = vmax.f32 %v141_v20, 0.0 }
  0xdb   :  { %v154_v25 = vmax.f32 %v136_v22, 0.0  ;;  %v417_v26 = vpop.f32.mrb[2].mxu0 }
  0xdc   :  { %v151_v27 = vadd.f32 %v417_v26, %v54_v24  ;;  %v145_v28 = vpop.f32.mrb[3].mxu0 }
  0xdd   :  { %v146_v29 = vadd.f32 %v145_v28, %v49_v17  ;;  %v443_v30 = vpack.c.bf16 %v155_v23, %v154_v25 }
  0xde   :  { %v157_v31 = vmax.f32 %v151_v27, 0.0 }
  0xdf   :  { %v156_v32 = vmax.f32 %v146_v29, 0.0  ;;  %444 = vmatprep.subr.bf16.mxu1 %v443_v30 }
  0xe0   :  { %446 = vmatpush3.bf16.msra.mxu1 %v443_v30 }
  0xe1   :  { %v447_v33 = vpack.c.bf16 %v157_v31, %v156_v32 }
  0xe3   :  { %448 = vmatprep.subr.bf16.mxu1 %v447_v33 }
  0xe4   :  { %450 = vmatpush3.bf16.msra.mxu1 %v447_v33 }
  0xe7   :  { %427 = vmatmul.mubr.msk.f32.vlgmr.msra.gmra.mrb[0].mxu1 %vm186_vm1, %v159_v34 }
  0xe8   :  { %429 = vmatprep.mubr.msk.f32.mxu1 %vm186_vm1, %v160_v35 }
  0xeb   :  { %430 = vmatmul.mubr.msk.f32.gmra.mrb[2].mxu1 %vm186_vm1, %v161_v36 }
 0x1ba   :  { %v428_v41 = vpop.f32.mrb[0].mxu1 }
 0x1bb   :  { %v271_v42 = vadd.f32 %v428_v41, %v174_v39  ;;  %v265_v43 = vpop.f32.mrb[1].mxu1 }
 0x1bc   :  { %v266_v44 = vadd.f32 %v265_v43, %v169_v40 }
 0x1bd   :  { %v285_v45 = vmax.f32 %v271_v42, 0.0 }
 0x1be   :  { %v284_v47 = vmax.f32 %v266_v44, 0.0  ;;  %v431_v48 = vpop.f32.mrb[2].mxu1 }
 0x1bf   :  { %v281_v50 = vadd.f32 %v431_v48, %v184_v46  ;;  %v275_v51 = vpop.f32.mrb[3].mxu1 }
 0x1c0   :  { %v452_v52 = vpack.c.bf16 %v285_v45, %v284_v47  ;;  %v276_v53 = vadd.f32 %v275_v51, %v179_v49 }
 0x1c1   :  { %v287_v54 = vmax.f32 %v281_v50, 0.0 }
 0x1c2   :  { %v286_v55 = vmax.f32 %v276_v53, 0.0  ;;  %453 = vmatpush3.bf16.msra.mxu0 %v452_v52 }
 0x1c3   :  { %454 = vmatprep.subr.bf16.mxu0 %v489_v37 }
 0x1c4   :  { %v455_v56 = vpack.c.bf16 %v287_v54, %v286_v55 }
 0x1c6   :  { %456 = vmatpush3.bf16.msra.mxu0 %v455_v56 }
 0x1c9   :  { %441 = vmatmul.mubr.msk.f32.vlgmr.msra.gmra.mrb[4].mxu0 %vm186_vm1, %v288_v57 }
 0x29c   :  { %v364_v59 = vpop.f32.mrb[4].mxu0 }
 0x29d   :  { %v365_v60 = vadd.f32 %v364_v59, %v293_v58  ;;  %v442_v61 = vpop.f32.mrb[5].mxu0 }
 0x29f   :  { %368 = vst [vmem:[#allocation2] sm:$0xff] %v365_v60 }
 0x2a0   :  { %475 = shalt.err (!%p472_p4)
}
 0x2a1   :  { %s476_s5 = scalar_lea.hbm %s618_s7, 128 }
 0x2a2   :  { %p477_p5 = scmp.ne.s32.totalorder %s618_s7, %s476_s5  ;;  %p480_p6 = scmp.lt.u32.totalorder %s476_s5, %s618_s7 }
 0x2a4   :  { %p482_p7 = pnand %p480_p6, %p477_p5 }
 0x2a6   :  { %485 = shalt.err (!%p482_p7)
}
 0x2a7   :  { %378 = dma.vmem_to_hbm [thread:$0]  %s376_s0, 128, %s618_s7, [#allocation3]  }
 0x2a8   :  { %486 = dma.done.wait [#allocation3], 128  }
 0x2a9   :  { %487 = vsyncadd [#allocation3], 4294967168 }
 0x2aa   :  { %382 = vsyncpa [#allocation3], 1 }

</bundles_post_ra>
